<compile_context>
chip_gen: v5e
topology: v5e:2x2
jax: 0.10.0
libtpu: 0.0.40
codegen_flags: <defaults>
</compile_context>

<pallas_src>
import functools

import jax
import jax.numpy as jnp
from jax.experimental import pallas as pl
from jax.experimental.pallas import tpu as pltpu


# ---------------------------------------------------------------------------
# Kernel body: (1 + tanh(x)) / 2   (tanh -> EUP, add/mul -> VPU; DMA-bound)
# ---------------------------------------------------------------------------
def _tanh_half_kernel(x_ref, o_ref):
    x = x_ref[...]
    cdt = jnp.promote_types(x.dtype, jnp.float32)  # compute in >= f32, cast on store
    y = (1.0 + jnp.tanh(x.astype(cdt))) * 0.5
    o_ref[...] = y.astype(o_ref.dtype)


_SMALL_ELEMS = 128 * 1024        # below this, plain jnp beats kernel dispatch
_MIN_PIPELINE_BYTES = 1 << 20    # above this, keep >= ~8 grid steps
_MIN_GRID_STEPS = 8


def _round_up(a: int, b: int) -> int:
    return ((a + b - 1) // b) * b


def _sublane_quantum(itemsize: int) -> int:
    # Native VMEM tiling quantum along the second-minor dim per dtype width.
    return {4: 8, 2: 16, 1: 32}.get(itemsize, 8)


@functools.lru_cache(maxsize=1)
def _chip_budget():
    """(block_bytes, vmem_limit_bytes) tuned per TPU generation.

    4 live buffers (input + output, double-buffered) * block_bytes must fit
    the scoped VMEM limit with headroom.
    """
    try:
        phys = int(pltpu.get_tpu_info().vmem_capacity_bytes)
    except Exception:
        phys = 64 << 20  # conservative default (v7x-sized)
    if phys >= (100 << 20):
        # v5e / v6e: 128 MiB physical VMEM; raise scoped limit past the
        # 16/32 MiB defaults so 4 x 6 MiB live buffers fit comfortably.
        return 6 << 20, 64 << 20
    # v7x: 64 MiB physical per TC; 4 x 6 MiB = 24 MiB within 32 MiB scoped.
    return 6 << 20, 32 << 20


def _jnp_ref(x: jax.Array) -> jax.Array:
    cdt = jnp.promote_types(x.dtype, jnp.float32)
    return ((1.0 + jnp.tanh(x.astype(cdt))) * 0.5).astype(x.dtype)


def _cost(total: int, itemsize: int) -> pl.CostEstimate:
    return pl.CostEstimate(
        flops=2 * total, transcendentals=total, bytes_accessed=2 * total * itemsize
    )


# ---------------------------------------------------------------------------
# 2D path: (rows, lanes) with row tiling and (if needed) lane tiling.
# ---------------------------------------------------------------------------
def _choose_tiles(M: int, N: int, itemsize: int, block_bytes: int):
    q = _sublane_quantum(itemsize)
    total_bytes = M * N * itemsize

    # Lane (last-dim) tiling: full extent if a q-row stripe fits the budget,
    # otherwise the widest 128-multiple stripe that does.
    if q * N * itemsize <= block_bytes:
        tile_lanes = N
    else:
        tile_lanes = max(128, (block_bytes // (q * itemsize)) // 128 * 128)
    lane_steps = pl.cdiv(N, tile_lanes)

    # Row tiling from the remaining budget.
    tile_rows = max(q, (block_bytes // (tile_lanes * itemsize)) // q * q)

    # Keep the pipeline full (and both v7x TCs busy) for anything > ~1 MiB.
    min_steps = _MIN_GRID_STEPS if total_bytes > _MIN_PIPELINE_BYTES else 1
    if lane_steps * pl.cdiv(M, tile_rows) < min_steps:
        want_rows = pl.cdiv(min_steps, lane_steps)
        tile_rows = min(tile_rows, max(q, _round_up(pl.cdiv(M, want_rows), q)))
    if lane_steps * pl.cdiv(M, tile_rows) < min_steps and N >= 2 * 128:
        want_lanes = pl.cdiv(min_steps, pl.cdiv(M, tile_rows))
        tile_lanes = min(tile_lanes, max(128, _round_up(pl.cdiv(N, want_lanes), 128)))
        lane_steps = pl.cdiv(N, tile_lanes)

    # Full-extent clamps (the (8,128) divisibility rule is waived at full dim).
    if tile_rows >= M:
        tile_rows = M
    if tile_lanes >= N:
        tile_lanes = N
    return tile_rows, tile_lanes


def _run_2d(x2: jax.Array) -> jax.Array:
    M, N = x2.shape
    itemsize = jnp.dtype(x2.dtype).itemsize
    block_bytes, vmem_limit = _chip_budget()
    tile_rows, tile_lanes = _choose_tiles(M, N, itemsize, block_bytes)
    grid = (pl.cdiv(M, tile_rows), pl.cdiv(N, tile_lanes))
    total = M * N

    return pl.pallas_call(
        _tanh_half_kernel,
        out_shape=jax.ShapeDtypeStruct((M, N), x2.dtype),
        grid_spec=pltpu.PrefetchScalarGridSpec(
            num_scalar_prefetch=0,
            grid=grid,
            in_specs=[pl.BlockSpec((tile_rows, tile_lanes), lambda i, j: (i, j))],
            out_specs=pl.BlockSpec((tile_rows, tile_lanes), lambda i, j: (i, j)),
        ),
        compiler_params=pltpu.CompilerParams(
            dimension_semantics=("parallel", "parallel"),
            vmem_limit_bytes=vmem_limit,
        ),
        cost_estimate=_cost(total, itemsize),
    )(x2)


# ---------------------------------------------------------------------------
# 1D path: odd-length flat arrays, single call, ragged last block masked.
# ---------------------------------------------------------------------------
def _run_1d(x1: jax.Array) -> jax.Array:
    n = x1.shape[0]
    itemsize = jnp.dtype(x1.dtype).itemsize
    block_bytes, vmem_limit = _chip_budget()

    # Conservative 1D chunk (<=128K elements, multiple of 1024 = 8*128): 1D VMEM
    # tiling can be less dense than 2D, so keep 4 live buffers well in budget.
    max_elems = min(block_bytes // itemsize, 128 * 1024)
    chunk = max(1024, (max_elems // 1024) * 1024)
    if n * itemsize > _MIN_PIPELINE_BYTES:
        chunk = min(chunk, max(1024, _round_up(pl.cdiv(n, _MIN_GRID_STEPS), 1024)))
    if chunk >= n:
        chunk = n  # full extent
    grid = (pl.cdiv(n, chunk),)

    return pl.pallas_call(
        _tanh_half_kernel,
        out_shape=jax.ShapeDtypeStruct((n,), x1.dtype),
        grid_spec=pltpu.PrefetchScalarGridSpec(
            num_scalar_prefetch=0,
            grid=grid,
            in_specs=[pl.BlockSpec((chunk,), lambda i: (i,))],
            out_specs=pl.BlockSpec((chunk,), lambda i: (i,)),
        ),
        compiler_params=pltpu.CompilerParams(
            dimension_semantics=("parallel",),
            vmem_limit_bytes=vmem_limit,
        ),
        cost_estimate=_cost(n, itemsize),
    )(x1)


# ---------------------------------------------------------------------------
# Public wrapper (forward of the scvi scar `tanh` module).
# ---------------------------------------------------------------------------
def scar_tanh(x: jax.Array) -> jax.Array:
    """Elementwise (1 + tanh(x)) / 2. Expects floating-point input."""
    orig_shape = x.shape
    total = x.size

    # Tiny / empty inputs: kernel dispatch + pipeline warm-up would dominate.
    if total == 0 or total < _SMALL_ELEMS:
        return _jnp_ref(x)

    if total % 128 == 0:
        # Lane-dense flatten: widest lane count (multiple of 128) dividing the
        # element count -> unmasked vector stores, zero padding.
        lanes = 128
        for cand in (4096, 2048, 1024, 512, 256):
            if total % cand == 0:
                lanes = cand
                break
        return _run_2d(x.reshape(-1, lanes)).reshape(orig_shape)

    if x.ndim >= 2:
        # Keep the natural last dim; rows are tiled, and overly wide rows get a
        # second (lane) grid axis instead of falling back to XLA.
        return _run_2d(x.reshape(-1, orig_shape[-1])).reshape(orig_shape)

    # Large odd-length 1D: single pallas_call over the flat array; the ragged
    # last block is masked by Pallas (no head/tail split, no concatenate copy).
    return _run_1d(x.reshape(-1)).reshape(orig_shape)


if __name__ == "__main__":
    key = jax.random.PRNGKey(0)
    ks = jax.random.split(key, 6)

    tests = [
        # Small activation shape typical of the module (batch, hidden): jnp path.
        jax.random.normal(ks[0], (2, 32), dtype=jnp.float32) * 3.0,
        # Lane-dense flatten path, pipelined row grid.
        jax.random.normal(ks[1], (512, 1024), dtype=jnp.float32) * 3.0,
        # Ragged rows, full-lane blocks (masked tail vreg per row).
        jax.random.normal(ks[2], (300, 1000), dtype=jnp.float32) * 3.0,
        # Very wide rows -> 2D lane-tiled grid (previously a jnp bailout).
        jax.random.normal(ks[3], (4, 262144), dtype=jnp.float32) * 3.0,
        # Odd-length 1D -> single-call 1D grid with masked ragged tail.
        jax.random.normal(ks[4], (200003,), dtype=jnp.float32) * 3.0,
    ]
    for x in tests:
        y = jax.block_until_ready(scar_tanh(x))
        y_ref = (1.0 + jnp.tanh(x)) / 2.0
        assert y.shape == x.shape and y.dtype == x.dtype
        assert jnp.allclose(y, y_ref, atol=1e-6, rtol=1e-6), x.shape

    # bf16 coverage (compute-in-f32, cast on store).
    xb = (jax.random.normal(ks[5], (512, 1024), dtype=jnp.float32) * 3.0).astype(
        jnp.bfloat16
    )
    yb = jax.block_until_ready(scar_tanh(xb))
    yb_ref = ((1.0 + jnp.tanh(xb.astype(jnp.float32))) / 2.0).astype(jnp.bfloat16)
    assert yb.shape == xb.shape and yb.dtype == xb.dtype
    assert jnp.allclose(
        yb.astype(jnp.float32), yb_ref.astype(jnp.float32), atol=1e-2, rtol=1e-2
    )

    print("KERNEL_OK")
</pallas_src>

<mosaic_0001>
module attributes {stable_mosaic.version = 11 : i64} {
  func.func @_tanh_half_kernel(%arg0: i32, %arg1: i32, %arg2: memref<16x4096xf32, #tpu.memory_space<vmem>>, %arg3: memref<16x4096xf32, #tpu.memory_space<vmem>>) attributes {dimension_semantics = [#tpu.dimension_semantics<parallel>, #tpu.dimension_semantics<parallel>], iteration_bounds = array<i64: 8, 1>, scalar_prefetch = 0 : i64, scratch_operands = 0 : i64, tpu.core_type = #tpu.core_type<tc>, window_params = [{transform_indices = @transform_0, window_bounds = array<i64: 16, 4096>}, {transform_indices = @transform_1, window_bounds = array<i64: 16, 4096>}]} {
    %c0 = arith.constant 0 : index
    %c0_0 = arith.constant 0 : index
    %0 = vector.load %arg2[%c0, %c0_0] : memref<16x4096xf32, #tpu.memory_space<vmem>>, vector<16x4096xf32>
    %1 = math.tanh %0 : vector<16x4096xf32>
    %cst = arith.constant 1.000000e+00 : f32
    %2 = vector.broadcast %cst : f32 to vector<16x4096xf32>
    %3 = arith.addf %2, %1 : vector<16x4096xf32>
    %cst_1 = arith.constant 5.000000e-01 : f32
    %4 = vector.broadcast %cst_1 : f32 to vector<16x4096xf32>
    %5 = arith.mulf %3, %4 : vector<16x4096xf32>
    %c0_2 = arith.constant 0 : index
    %c0_3 = arith.constant 0 : index
    %6 = vector.load %arg3[%c0_2, %c0_3] : memref<16x4096xf32, #tpu.memory_space<vmem>>, vector<16x4096xf32>
    tpu.vector_store %arg3[%c0_2, %c0_3], %5 {strides = array<i32>} : memref<16x4096xf32, #tpu.memory_space<vmem>>, vector<16x4096xf32>,
    return
  }
  func.func @transform_0(%arg0: i32, %arg1: i32) -> (i32, i32) {
    %c0_i32 = arith.constant 0 : i32
    return %arg0, %arg1 : i32, i32
  }
  func.func @transform_1(%arg0: i32, %arg1: i32) -> (i32, i32) {
    %c0_i32 = arith.constant 0 : i32
    return %arg0, %arg1 : i32, i32
  }
}

</mosaic_0001>

<bundles_post_ra>
// kernel: tpu_custom_call.1
= control target key start
LH: loop header
LB: loop body
LE: loop exit
PB: predicated region body
PF: predicated region fallthrough
CT: control target
= control target key end

     0   :  { %6 = vsyncpa [#allocation3], 0  ;;  %s1184_s0 = inlined_call_operand.hbm [shape: f32[128,4096], index: 0, kind: input, shape index: {}]   ;;  %s1185_s1 = inlined_call_operand.hbm [shape: f32[128,4096], index: 1, kind: output, shape index: {}]  }
   0x1   :  { %8 = vsyncpa [#allocation3 + $0x1], 0 }
   0x2   :  { %9 = vsyncpa [#allocation4], 0 }
   0x3   :  { %11 = vsyncpa [#allocation4 + $0x1], 0  ;;  %s929_s6 = smov 0   ;;  %s931_s7 = smov 0  }
   0x4   :  { %s933_s8 = smov 0   ;;  %s935_s9 = smov 0  }
   0x5   :  { %s937_s10 = smov 0   ;;  %s939_s11 = smov 0  }
   0x6 LB: > { %s586_s12 = sadd.s32 4294967295, %s913_s11   ;;  %s587_s13 = sadd.s32 4294967294, %s913_s11   ;;  %s913_s11 = sphi %s939_s11, %s17_s11   ;;  %s909_s10 = sphi %s937_s10, %s1194_s10   ;;  %s905_s9 = sphi %s935_s9, %s1193_s9   ;;  %s901_s8 = sphi %s933_s8, %s1192_s8   ;;  %s897_s7 = sphi %s931_s7, %s1191_s7   ;;  %s893_s6 = sphi %s929_s6, %s1190_s6  }
   0x7   : > { %s29_s14 = sadd.s32 1, %s909_s10  ;;  %s38_s15 = sadd.s32 1, %s901_s8 }
   0x8   : > { %p31_p0 = scmp.ge.s32.totalorder %s29_s14, 8  ;;  %p45_p1 = scmp.ne.s32.totalorder %s901_s8, %s897_s7 }
   0x9   : > { %p46_p2 = scmp.eq.s32.totalorder %s913_s11, 0  ;;  %p51_p3 = scmp.ne.s32.totalorder %s897_s7, %s893_s6 }
   0xa   : > { %s1196_s14 = smov (%p31_p0, %s29_s14), 0  ;;  %p52_p5 = scmp.eq.s32.totalorder %s586_s12, 0 }
   0xb   : > { %p970_p4 = por %p46_p2, %p45_p1  ;;  %s33_s17 = ssub.s32 %s909_s10, %s1196_s14 }
   0xc   : > { %p77_p6 = scmp.eq.s32.totalorder %s586_s12, 7  ;;  %p36_p7 = scmp.eq.s32.totalorder %s33_s17, 0 }
   0xd   : > { %p976_p8 = por %p52_p5, %p51_p3  ;;  %p83_p10 = scmp.eq.s32.totalorder %s587_s13, 7 }
   0xe   : > { %p980_p9 = por %p77_p6, %p45_p1  ;;  %p619_p12 = scmp.lt.s32.totalorder %s913_s11, 8 }
   0xf   : > { %s985_s20 = scalar_select %p36_p7, %s901_s8, %s38_s15  }
  0x10   : > { %p987_p11 = por %p83_p10, %p51_p3  ;;  %s103_s22 = sand.u32 1, %s901_s8  }
  0x11   : > { %s590_s23 = sshll.u32 %s103_s22, 9  ;;  %s604_s24 = sshll.u32 %s909_s10, 9 }
  0x12   : > { %s115_s27 = scalar_lea.hbm %s1184_s0, %s604_s24  ;;  %s107_s28 = scalar_lea.vmem [#allocation2], %s590_s23 }
  0x13   : > { %s118_s29 = sshll.u32 %s107_s28, 4  ;;  %s116_s30 = sshll.u32 %s115_s27, 4  ;;  %s119_s29 = int_to_ptr.vmem [resolvable:$true] %s118_s29  ;;  %s117_s30 = int_to_ptr.hbm [resolvable:$true] %s116_s30 }
  0x14   : > { %p612_p13 = pnand %p619_p12, %p970_p4  ;;  %p594_p0 = scmp.ge.s32.totalorder %s913_s11, 1 }
  0x15   : > { %s104_s2 = scalar_lea.sflag [#allocation3], %s103_s22  ;;  %s915_s3 = smov 4096  }
  0x16   : > { %s916_s4 = smov 256   ;;  %p126_p1 = scmp.lt.s32.totalorder %s913_s11, 9 }
  0x17   : > { %614 = dma.hbm_to_vmem [thread:$0]  (!%p612_p13), %s117_s30, 8192, %s119_s29, %s104_s2, %s915_s3, %s915_s3, %s916_s4  }
  0x18   : > { %p127_p2 = pnand %p594_p0, %p126_p1 }
  0x19   : > { %s1002_s5 = sand.u32 (!%p127_p2), 1, %s897_s7  }
  0x1a   : > { %130 = sbr.rel (%p127_p2) target bundleno = 111 (0x6f), region = 24  ;;  %s595_s12 = sshll.u32 (!%p127_p2), %s1002_s5, 9 }
  0x1b   : > { %s133_s13 = scalar_lea.sflag (!%p127_p2), [#allocation3], %s1002_s5  ;;  %s1008_s15 = scalar_lea.vmem (!%p127_p2), [#allocation2], %s595_s12 }
  0x1f   : > { %884 = dma.done.wait (%p976_p8), %s133_s13, 8192  }
  0x20   : > { %886 = vsyncadd (%p976_p8), %s133_s13, 4294959104  ;;  %v160_v0 = vld [vmem:[%s1008_s15] sm:$0xff]  ;;  %v161_v1 = vld [vmem:[%s1008_s15 + $0x8] sm:$0xff]  ;;  %s1030_s16 = scalar_lea.vmem [#allocation5], %s595_s12  ;;  %s606_s17 = sshll.u32 %s905_s9, 9 }
  0x21   : > { %v162_v2 = vld [vmem:[%s1008_s15 + $0x10] sm:$0xff]  ;;  %673 = vtanh.f32 %v160_v0  ;;  %v163_v3 = vld [vmem:[%s1008_s15 + $0x18] sm:$0xff]  ;;  %v164_v4 = vld [vmem:[%s1008_s15 + $0x20] sm:$0xff]  ;;  %s495_s9 = scalar_lea.hbm %s1185_s1, %s606_s17  ;;  %s496_s23 = sshll.u32 %s1030_s16, 4  ;;  %s497_s23 = int_to_ptr.vmem [resolvable:$true] %s496_s23 }
  0x22   : > { %675 = vtanh.f32 %v161_v1  ;;  %v165_v5 = vld [vmem:[%s1008_s15 + $0x28] sm:$0xff]  ;;  %v166_v6 = vld [vmem:[%s1008_s15 + $0x30] sm:$0xff]  ;;  %v167_v7 = vld [vmem:[%s1008_s15 + $0x38] sm:$0xff]  ;;  %s498_s24 = sshll.u32 %s495_s9, 4  ;;  %s481_s25 = scalar_lea.sflag [#allocation4], %s1002_s5  ;;  %s499_s24 = int_to_ptr.hbm [resolvable:$true] %s498_s24 }
  0x23   : > { %677 = vtanh.f32 %v162_v2  ;;  %v168_v8 = vld [vmem:[%s1008_s15 + $0x40] sm:$0xff]  ;;  %v169_v10 = vld [vmem:[%s1008_s15 + $0x48] sm:$0xff]  ;;  %v170_v13 = vld [vmem:[%s1008_s15 + $0x50] sm:$0xff]  ;;  %s845_s26 = sshra.s32 %s499_s24, 4  ;;  %s851_s30 = scalar_lea.hbm %s1185_s1, 4096  ;;  %s846_s26 = int_to_ptr.hbm [resolvable:$true] %s845_s26 }
  0x24   : > { %679 = vtanh.f32 %v163_v3  ;;  %v171_v16 = vld [vmem:[%s1008_s15 + $0x58] sm:$0xff]  ;;  %v172_v20 = vld [vmem:[%s1008_s15 + $0x60] sm:$0xff]  ;;  %v173_v24 = vld [vmem:[%s1008_s15 + $0x68] sm:$0xff]  ;;  %s847_s27 = scalar_lea.hbm %s846_s26, 512  ;;  %p852_p6 = scmp.lt.s32.totalorder %s846_s26, %s1185_s1 }
  0x25   : > { %681 = vtanh.f32 %v164_v4  ;;  %v174_v28 = vld [vmem:[%s1008_s15 + $0x70] sm:$0xff]  ;;  %v175_v32 = vld [vmem:[%s1008_s15 + $0x78] sm:$0xff]  ;;  %v176_v36 = vld [vmem:[%s1008_s15 + $0x80] sm:$0xff]  ;;  %p848_p3 = scmp.ne.s32.totalorder %s846_s26, %s847_s27  ;;  %p853_p7 = scmp.lt.s32.totalorder %s851_s30, %s847_s27 }
  0x26   : > { %683 = vtanh.f32 %v165_v5  ;;  %v177_v40 = vld [vmem:[%s1008_s15 + $0x88] sm:$0xff]  ;;  %v178_v44 = vld [vmem:[%s1008_s15 + $0x90] sm:$0xff]  ;;  %v179_v48 = vld [vmem:[%s1008_s15 + $0x98] sm:$0xff] }
  0x27   : > { %v674_v9 = vpop.eup %673  ;;  %685 = vtanh.f32 %v166_v6  ;;  %v180_v52 = vld [vmem:[%s1008_s15 + $0xa0] sm:$0xff]  ;;  %v181_v56 = vld [vmem:[%s1008_s15 + $0xa8] sm:$0xff]  ;;  %v182_v60 = vld [vmem:[%s1008_s15 + $0xb0] sm:$0xff]  ;;  %p849_p4 = pnand %p848_p3, %p980_p9  ;;  %p854_p8 = por %p853_p7, %p852_p6 }
  0x28   : > { %v676_v11 = vpop.eup %675  ;;  %v288_v12 = vadd.f32 1.0, %v674_v9  ;;  %687 = vtanh.f32 %v167_v7  ;;  %v183_v0 = vld [vmem:[%s1008_s15 + $0xb8] sm:$0xff]  ;;  %v184_v4 = vld [vmem:[%s1008_s15 + $0xc0] sm:$0xff] }
  0x29   : > { %v678_v14 = vpop.eup %677  ;;  %v289_v15 = vadd.f32 1.0, %v676_v11  ;;  %689 = vtanh.f32 %v168_v8  ;;  %v185_v8 = vld [vmem:[%s1008_s15 + $0xc8] sm:$0xff]  ;;  %p850_p5 = pneg %p849_p4 }
  0x2a   : > { %v680_v17 = vpop.eup %679  ;;  %v352_v18 = vmul.f32 0.5, %v288_v12  ;;  %v290_v19 = vadd.f32 1.0, %v678_v14  ;;  %691 = vtanh.f32 %v169_v10  ;;  %v186_v12 = vld [vmem:[%s1008_s15 + $0xd0] sm:$0xff] }
  0x2b   : > { %v682_v21 = vpop.eup %681  ;;  %v353_v22 = vmul.f32 0.5, %v289_v15  ;;  %v291_v23 = vadd.f32 1.0, %v680_v17  ;;  %693 = vtanh.f32 %v170_v13  ;;  %p855_p10 = pnand %p854_p8, %p850_p5 }
  0x2c   : > { %v684_v25 = vpop.eup %683  ;;  %416 = vst [vmem:[%s1030_s16] sm:$0xff] %v352_v18  ;;  %v354_v26 = vmul.f32 0.5, %v290_v19  ;;  %v292_v27 = vadd.f32 1.0, %v682_v21  ;;  %695 = vtanh.f32 %v171_v16  ;;  %v187_v16 = vld [vmem:[%s1008_s15 + $0xd8] sm:$0xff] }
  0x2d   : > { %v686_v29 = vpop.eup %685  ;;  %417 = vst [vmem:[%s1030_s16 + $0x8] sm:$0xff] %v353_v22  ;;  %v355_v30 = vmul.f32 0.5, %v291_v23  ;;  %v293_v31 = vadd.f32 1.0, %v684_v25  ;;  %697 = vtanh.f32 %v172_v20  ;;  %v188_v20 = vld [vmem:[%s1008_s15 + $0xe0] sm:$0xff] }
  0x2e   : > { %v688_v33 = vpop.eup %687  ;;  %418 = vst [vmem:[%s1030_s16 + $0x10] sm:$0xff] %v354_v26  ;;  %v356_v34 = vmul.f32 0.5, %v292_v27  ;;  %v294_v35 = vadd.f32 1.0, %v686_v29  ;;  %699 = vtanh.f32 %v173_v24  ;;  %v189_v24 = vld [vmem:[%s1008_s15 + $0xe8] sm:$0xff] }
  0x2f   : > { %v690_v37 = vpop.eup %689  ;;  %419 = vst [vmem:[%s1030_s16 + $0x18] sm:$0xff] %v355_v30  ;;  %v357_v38 = vmul.f32 0.5, %v293_v31  ;;  %v295_v39 = vadd.f32 1.0, %v688_v33  ;;  %701 = vtanh.f32 %v174_v28  ;;  %v190_v28 = vld [vmem:[%s1008_s15 + $0xf0] sm:$0xff] }
  0x30   : > { %v692_v41 = vpop.eup %691  ;;  %420 = vst [vmem:[%s1030_s16 + $0x20] sm:$0xff] %v356_v34  ;;  %v358_v42 = vmul.f32 0.5, %v294_v35  ;;  %v296_v43 = vadd.f32 1.0, %v690_v37  ;;  %703 = vtanh.f32 %v175_v32  ;;  %v191_v32 = vld [vmem:[%s1008_s15 + $0xf8] sm:$0xff] }
  0x31   : > { %v694_v45 = vpop.eup %693  ;;  %421 = vst [vmem:[%s1030_s16 + $0x28] sm:$0xff] %v357_v38  ;;  %v359_v46 = vmul.f32 0.5, %v295_v39  ;;  %v297_v47 = vadd.f32 1.0, %v692_v41  ;;  %705 = vtanh.f32 %v176_v36  ;;  %v192_v36 = vld [vmem:[%s1008_s15 + $0x100] sm:$0xff] }
  0x32   : > { %v696_v49 = vpop.eup %695  ;;  %422 = vst [vmem:[%s1030_s16 + $0x30] sm:$0xff] %v358_v42  ;;  %v360_v50 = vmul.f32 0.5, %v296_v43  ;;  %v298_v51 = vadd.f32 1.0, %v694_v45  ;;  %707 = vtanh.f32 %v177_v40  ;;  %v193_v40 = vld [vmem:[%s1008_s15 + $0x108] sm:$0xff] }
  0x33   : > { %v698_v53 = vpop.eup %697  ;;  %423 = vst [vmem:[%s1030_s16 + $0x38] sm:$0xff] %v359_v46  ;;  %v361_v54 = vmul.f32 0.5, %v297_v47  ;;  %v299_v55 = vadd.f32 1.0, %v696_v49  ;;  %709 = vtanh.f32 %v178_v44  ;;  %v194_v44 = vld [vmem:[%s1008_s15 + $0x110] sm:$0xff] }
  0x34   : > { %v700_v57 = vpop.eup %699  ;;  %424 = vst [vmem:[%s1030_s16 + $0x40] sm:$0xff] %v360_v50  ;;  %v362_v58 = vmul.f32 0.5, %v298_v51  ;;  %v300_v59 = vadd.f32 1.0, %v698_v53  ;;  %711 = vtanh.f32 %v179_v48  ;;  %v195_v48 = vld [vmem:[%s1008_s15 + $0x118] sm:$0xff] }
  0x35   : > { %v702_v61 = vpop.eup %701  ;;  %425 = vst [vmem:[%s1030_s16 + $0x48] sm:$0xff] %v361_v54  ;;  %v363_v62 = vmul.f32 0.5, %v299_v55  ;;  %v301_v63 = vadd.f32 1.0, %v700_v57  ;;  %713 = vtanh.f32 %v180_v52  ;;  %v196_v52 = vld [vmem:[%s1008_s15 + $0x120] sm:$0xff] }
  0x36   : > { %v704_v1 = vpop.eup %703  ;;  %426 = vst [vmem:[%s1030_s16 + $0x50] sm:$0xff] %v362_v58  ;;  %v364_v2 = vmul.f32 0.5, %v300_v59  ;;  %v302_v3 = vadd.f32 1.0, %v702_v61  ;;  %715 = vtanh.f32 %v181_v56  ;;  %v197_v56 = vld [vmem:[%s1008_s15 + $0x128] sm:$0xff] }
  0x37   : > { %v706_v5 = vpop.eup %705  ;;  %427 = vst [vmem:[%s1030_s16 + $0x58] sm:$0xff] %v363_v62  ;;  %v365_v6 = vmul.f32 0.5, %v301_v63  ;;  %v303_v7 = vadd.f32 1.0, %v704_v1  ;;  %717 = vtanh.f32 %v182_v60  ;;  %v198_v60 = vld [vmem:[%s1008_s15 + $0x130] sm:$0xff] }
  0x38   : > { %v708_v9 = vpop.eup %707  ;;  %428 = vst [vmem:[%s1030_s16 + $0x60] sm:$0xff] %v364_v2  ;;  %v366_v10 = vmul.f32 0.5, %v302_v3  ;;  %v304_v11 = vadd.f32 1.0, %v706_v5  ;;  %719 = vtanh.f32 %v183_v0  ;;  %v199_v0 = vld [vmem:[%s1008_s15 + $0x138] sm:$0xff] }
  0x39   : > { %v710_v13 = vpop.eup %709  ;;  %429 = vst [vmem:[%s1030_s16 + $0x68] sm:$0xff] %v365_v6  ;;  %v367_v14 = vmul.f32 0.5, %v303_v7  ;;  %v305_v15 = vadd.f32 1.0, %v708_v9  ;;  %721 = vtanh.f32 %v184_v4  ;;  %v200_v4 = vld [vmem:[%s1008_s15 + $0x140] sm:$0xff] }
  0x3a   : > { %v712_v17 = vpop.eup %711  ;;  %430 = vst [vmem:[%s1030_s16 + $0x70] sm:$0xff] %v366_v10  ;;  %v368_v18 = vmul.f32 0.5, %v304_v11  ;;  %v306_v19 = vadd.f32 1.0, %v710_v13  ;;  %723 = vtanh.f32 %v185_v8  ;;  %v201_v8 = vld [vmem:[%s1008_s15 + $0x148] sm:$0xff] }
  0x3b   : > { %v714_v21 = vpop.eup %713  ;;  %431 = vst [vmem:[%s1030_s16 + $0x78] sm:$0xff] %v367_v14  ;;  %v369_v22 = vmul.f32 0.5, %v305_v15  ;;  %v307_v23 = vadd.f32 1.0, %v712_v17  ;;  %725 = vtanh.f32 %v186_v12  ;;  %v202_v12 = vld [vmem:[%s1008_s15 + $0x150] sm:$0xff] }
  0x3c   : > { %v716_v25 = vpop.eup %715  ;;  %432 = vst [vmem:[%s1030_s16 + $0x80] sm:$0xff] %v368_v18  ;;  %v370_v26 = vmul.f32 0.5, %v306_v19  ;;  %v308_v27 = vadd.f32 1.0, %v714_v21  ;;  %727 = vtanh.f32 %v187_v16  ;;  %v203_v16 = vld [vmem:[%s1008_s15 + $0x158] sm:$0xff] }
  0x3d   : > { %v718_v29 = vpop.eup %717  ;;  %433 = vst [vmem:[%s1030_s16 + $0x88] sm:$0xff] %v369_v22  ;;  %v371_v30 = vmul.f32 0.5, %v307_v23  ;;  %v309_v31 = vadd.f32 1.0, %v716_v25  ;;  %729 = vtanh.f32 %v188_v20  ;;  %v204_v20 = vld [vmem:[%s1008_s15 + $0x160] sm:$0xff] }
  0x3e   : > { %v720_v33 = vpop.eup %719  ;;  %434 = vst [vmem:[%s1030_s16 + $0x90] sm:$0xff] %v370_v26  ;;  %v372_v34 = vmul.f32 0.5, %v308_v27  ;;  %v310_v35 = vadd.f32 1.0, %v718_v29  ;;  %731 = vtanh.f32 %v189_v24  ;;  %v205_v24 = vld [vmem:[%s1008_s15 + $0x168] sm:$0xff] }
  0x3f   : > { %v722_v37 = vpop.eup %721  ;;  %435 = vst [vmem:[%s1030_s16 + $0x98] sm:$0xff] %v371_v30  ;;  %v373_v38 = vmul.f32 0.5, %v309_v31  ;;  %v311_v39 = vadd.f32 1.0, %v720_v33  ;;  %733 = vtanh.f32 %v190_v28  ;;  %v206_v28 = vld [vmem:[%s1008_s15 + $0x170] sm:$0xff] }
  0x40   : > { %v724_v41 = vpop.eup %723  ;;  %436 = vst [vmem:[%s1030_s16 + $0xa0] sm:$0xff] %v372_v34  ;;  %v374_v42 = vmul.f32 0.5, %v310_v35  ;;  %v312_v43 = vadd.f32 1.0, %v722_v37  ;;  %735 = vtanh.f32 %v191_v32  ;;  %v207_v32 = vld [vmem:[%s1008_s15 + $0x178] sm:$0xff] }
  0x41   : > { %v726_v45 = vpop.eup %725  ;;  %437 = vst [vmem:[%s1030_s16 + $0xa8] sm:$0xff] %v373_v38  ;;  %v375_v46 = vmul.f32 0.5, %v311_v39  ;;  %v313_v47 = vadd.f32 1.0, %v724_v41  ;;  %737 = vtanh.f32 %v192_v36  ;;  %v208_v36 = vld [vmem:[%s1008_s15 + $0x180] sm:$0xff] }
  0x42   : > { %v728_v49 = vpop.eup %727  ;;  %438 = vst [vmem:[%s1030_s16 + $0xb0] sm:$0xff] %v374_v42  ;;  %v376_v50 = vmul.f32 0.5, %v312_v43  ;;  %v314_v51 = vadd.f32 1.0, %v726_v45  ;;  %739 = vtanh.f32 %v193_v40  ;;  %v209_v40 = vld [vmem:[%s1008_s15 + $0x188] sm:$0xff] }
  0x43   : > { %v730_v53 = vpop.eup %729  ;;  %439 = vst [vmem:[%s1030_s16 + $0xb8] sm:$0xff] %v375_v46  ;;  %v377_v54 = vmul.f32 0.5, %v313_v47  ;;  %v315_v55 = vadd.f32 1.0, %v728_v49  ;;  %741 = vtanh.f32 %v194_v44  ;;  %v210_v44 = vld [vmem:[%s1008_s15 + $0x190] sm:$0xff] }
  0x44   : > { %v732_v57 = vpop.eup %731  ;;  %440 = vst [vmem:[%s1030_s16 + $0xc0] sm:$0xff] %v376_v50  ;;  %v378_v58 = vmul.f32 0.5, %v314_v51  ;;  %v316_v59 = vadd.f32 1.0, %v730_v53  ;;  %743 = vtanh.f32 %v195_v48  ;;  %v211_v48 = vld [vmem:[%s1008_s15 + $0x198] sm:$0xff] }
  0x45   : > { %v734_v61 = vpop.eup %733  ;;  %441 = vst [vmem:[%s1030_s16 + $0xc8] sm:$0xff] %v377_v54  ;;  %v379_v62 = vmul.f32 0.5, %v315_v55  ;;  %v317_v63 = vadd.f32 1.0, %v732_v57  ;;  %745 = vtanh.f32 %v196_v52  ;;  %v212_v52 = vld [vmem:[%s1008_s15 + $0x1a0] sm:$0xff] }
  0x46   : > { %v736_v1 = vpop.eup %735  ;;  %442 = vst [vmem:[%s1030_s16 + $0xd0] sm:$0xff] %v378_v58  ;;  %v380_v2 = vmul.f32 0.5, %v316_v59  ;;  %v318_v3 = vadd.f32 1.0, %v734_v61  ;;  %747 = vtanh.f32 %v197_v56  ;;  %v213_v56 = vld [vmem:[%s1008_s15 + $0x1a8] sm:$0xff] }
  0x47   : > { %v738_v5 = vpop.eup %737  ;;  %443 = vst [vmem:[%s1030_s16 + $0xd8] sm:$0xff] %v379_v62  ;;  %v381_v6 = vmul.f32 0.5, %v317_v63  ;;  %v319_v7 = vadd.f32 1.0, %v736_v1  ;;  %749 = vtanh.f32 %v198_v60  ;;  %v214_v60 = vld [vmem:[%s1008_s15 + $0x1b0] sm:$0xff] }
  0x48   : > { %v740_v9 = vpop.eup %739  ;;  %444 = vst [vmem:[%s1030_s16 + $0xe0] sm:$0xff] %v380_v2  ;;  %v382_v10 = vmul.f32 0.5, %v318_v3  ;;  %v320_v11 = vadd.f32 1.0, %v738_v5  ;;  %751 = vtanh.f32 %v199_v0  ;;  %v215_v0 = vld [vmem:[%s1008_s15 + $0x1b8] sm:$0xff] }
  0x49   : > { %v742_v13 = vpop.eup %741  ;;  %445 = vst [vmem:[%s1030_s16 + $0xe8] sm:$0xff] %v381_v6  ;;  %v383_v14 = vmul.f32 0.5, %v319_v7  ;;  %v321_v15 = vadd.f32 1.0, %v740_v9  ;;  %753 = vtanh.f32 %v200_v4  ;;  %v216_v4 = vld [vmem:[%s1008_s15 + $0x1c0] sm:$0xff] }
  0x4a   : > { %v744_v17 = vpop.eup %743  ;;  %446 = vst [vmem:[%s1030_s16 + $0xf0] sm:$0xff] %v382_v10  ;;  %v384_v18 = vmul.f32 0.5, %v320_v11  ;;  %v322_v19 = vadd.f32 1.0, %v742_v13  ;;  %755 = vtanh.f32 %v201_v8  ;;  %v217_v8 = vld [vmem:[%s1008_s15 + $0x1c8] sm:$0xff] }
  0x4b   : > { %v746_v21 = vpop.eup %745  ;;  %447 = vst [vmem:[%s1030_s16 + $0xf8] sm:$0xff] %v383_v14  ;;  %v385_v22 = vmul.f32 0.5, %v321_v15  ;;  %v323_v23 = vadd.f32 1.0, %v744_v17  ;;  %757 = vtanh.f32 %v202_v12  ;;  %v218_v12 = vld [vmem:[%s1008_s15 + $0x1d0] sm:$0xff] }
  0x4c   : > { %v748_v25 = vpop.eup %747  ;;  %448 = vst [vmem:[%s1030_s16 + $0x100] sm:$0xff] %v384_v18  ;;  %v386_v26 = vmul.f32 0.5, %v322_v19  ;;  %v324_v27 = vadd.f32 1.0, %v746_v21  ;;  %759 = vtanh.f32 %v203_v16  ;;  %v219_v16 = vld [vmem:[%s1008_s15 + $0x1d8] sm:$0xff] }
  0x4d   : > { %v750_v29 = vpop.eup %749  ;;  %449 = vst [vmem:[%s1030_s16 + $0x108] sm:$0xff] %v385_v22  ;;  %v387_v30 = vmul.f32 0.5, %v323_v23  ;;  %v325_v31 = vadd.f32 1.0, %v748_v25  ;;  %761 = vtanh.f32 %v204_v20  ;;  %v220_v20 = vld [vmem:[%s1008_s15 + $0x1e0] sm:$0xff] }
  0x4e   : > { %v752_v33 = vpop.eup %751  ;;  %450 = vst [vmem:[%s1030_s16 + $0x110] sm:$0xff] %v386_v26  ;;  %v388_v34 = vmul.f32 0.5, %v324_v27  ;;  %v326_v35 = vadd.f32 1.0, %v750_v29  ;;  %763 = vtanh.f32 %v205_v24  ;;  %v221_v24 = vld [vmem:[%s1008_s15 + $0x1e8] sm:$0xff] }
  0x4f   : > { %v754_v37 = vpop.eup %753  ;;  %451 = vst [vmem:[%s1030_s16 + $0x118] sm:$0xff] %v387_v30  ;;  %v389_v38 = vmul.f32 0.5, %v325_v31  ;;  %v327_v39 = vadd.f32 1.0, %v752_v33  ;;  %765 = vtanh.f32 %v206_v28  ;;  %v222_v28 = vld [vmem:[%s1008_s15 + $0x1f0] sm:$0xff] }
  0x50   : > { %v756_v41 = vpop.eup %755  ;;  %452 = vst [vmem:[%s1030_s16 + $0x120] sm:$0xff] %v388_v34  ;;  %v390_v42 = vmul.f32 0.5, %v326_v35  ;;  %v328_v43 = vadd.f32 1.0, %v754_v37  ;;  %767 = vtanh.f32 %v207_v32  ;;  %v223_v32 = vld [vmem:[%s1008_s15 + $0x1f8] sm:$0xff] }
  0x51   : > { %v758_v45 = vpop.eup %757  ;;  %453 = vst [vmem:[%s1030_s16 + $0x128] sm:$0xff] %v389_v38  ;;  %v391_v46 = vmul.f32 0.5, %v327_v39  ;;  %v329_v47 = vadd.f32 1.0, %v756_v41  ;;  %769 = vtanh.f32 %v208_v36 }
  0x52   : > { %v760_v49 = vpop.eup %759  ;;  %454 = vst [vmem:[%s1030_s16 + $0x130] sm:$0xff] %v390_v42  ;;  %v392_v50 = vmul.f32 0.5, %v328_v43  ;;  %v330_v51 = vadd.f32 1.0, %v758_v45  ;;  %771 = vtanh.f32 %v209_v40 }
  0x53   : > { %v762_v53 = vpop.eup %761  ;;  %455 = vst [vmem:[%s1030_s16 + $0x138] sm:$0xff] %v391_v46  ;;  %v393_v54 = vmul.f32 0.5, %v329_v47  ;;  %v331_v55 = vadd.f32 1.0, %v760_v49  ;;  %773 = vtanh.f32 %v210_v44 }
  0x54   : > { %v764_v57 = vpop.eup %763  ;;  %456 = vst [vmem:[%s1030_s16 + $0x140] sm:$0xff] %v392_v50  ;;  %v394_v58 = vmul.f32 0.5, %v330_v51  ;;  %v332_v59 = vadd.f32 1.0, %v762_v53  ;;  %775 = vtanh.f32 %v211_v48 }
  0x55   : > { %v766_v61 = vpop.eup %765  ;;  %457 = vst [vmem:[%s1030_s16 + $0x148] sm:$0xff] %v393_v54  ;;  %v395_v62 = vmul.f32 0.5, %v331_v55  ;;  %v333_v63 = vadd.f32 1.0, %v764_v57  ;;  %777 = vtanh.f32 %v212_v52 }
  0x56   : > { %v768_v1 = vpop.eup %767  ;;  %458 = vst [vmem:[%s1030_s16 + $0x150] sm:$0xff] %v394_v58  ;;  %v396_v2 = vmul.f32 0.5, %v332_v59  ;;  %v334_v3 = vadd.f32 1.0, %v766_v61  ;;  %779 = vtanh.f32 %v213_v56 }
  0x57   : > { %v770_v5 = vpop.eup %769  ;;  %459 = vst [vmem:[%s1030_s16 + $0x158] sm:$0xff] %v395_v62  ;;  %v397_v6 = vmul.f32 0.5, %v333_v63  ;;  %v335_v7 = vadd.f32 1.0, %v768_v1  ;;  %781 = vtanh.f32 %v214_v60 }
  0x58   : > { %v772_v9 = vpop.eup %771  ;;  %460 = vst [vmem:[%s1030_s16 + $0x160] sm:$0xff] %v396_v2  ;;  %v398_v10 = vmul.f32 0.5, %v334_v3  ;;  %v336_v11 = vadd.f32 1.0, %v770_v5  ;;  %783 = vtanh.f32 %v215_v0 }
  0x59   : > { %v774_v13 = vpop.eup %773  ;;  %461 = vst [vmem:[%s1030_s16 + $0x168] sm:$0xff] %v397_v6  ;;  %v399_v14 = vmul.f32 0.5, %v335_v7  ;;  %v337_v15 = vadd.f32 1.0, %v772_v9  ;;  %785 = vtanh.f32 %v216_v4 }
  0x5a   : > { %v776_v17 = vpop.eup %775  ;;  %462 = vst [vmem:[%s1030_s16 + $0x170] sm:$0xff] %v398_v10  ;;  %v400_v18 = vmul.f32 0.5, %v336_v11  ;;  %v338_v19 = vadd.f32 1.0, %v774_v13  ;;  %787 = vtanh.f32 %v217_v8 }
  0x5b   : > { %v778_v21 = vpop.eup %777  ;;  %463 = vst [vmem:[%s1030_s16 + $0x178] sm:$0xff] %v399_v14  ;;  %v401_v22 = vmul.f32 0.5, %v337_v15  ;;  %v339_v23 = vadd.f32 1.0, %v776_v17  ;;  %789 = vtanh.f32 %v218_v12 }
  0x5c   : > { %v780_v25 = vpop.eup %779  ;;  %464 = vst [vmem:[%s1030_s16 + $0x180] sm:$0xff] %v400_v18  ;;  %v402_v26 = vmul.f32 0.5, %v338_v19  ;;  %v340_v27 = vadd.f32 1.0, %v778_v21  ;;  %791 = vtanh.f32 %v219_v16 }
  0x5d   : > { %v782_v29 = vpop.eup %781  ;;  %465 = vst [vmem:[%s1030_s16 + $0x188] sm:$0xff] %v401_v22  ;;  %v403_v30 = vmul.f32 0.5, %v339_v23  ;;  %v341_v31 = vadd.f32 1.0, %v780_v25  ;;  %793 = vtanh.f32 %v220_v20 }
  0x5e   : > { %v784_v33 = vpop.eup %783  ;;  %466 = vst [vmem:[%s1030_s16 + $0x190] sm:$0xff] %v402_v26  ;;  %v404_v34 = vmul.f32 0.5, %v340_v27  ;;  %v342_v35 = vadd.f32 1.0, %v782_v29  ;;  %795 = vtanh.f32 %v221_v24 }
  0x5f   : > { %v786_v36 = vpop.eup %785  ;;  %467 = vst [vmem:[%s1030_s16 + $0x198] sm:$0xff] %v403_v30  ;;  %v405_v37 = vmul.f32 0.5, %v341_v31  ;;  %v343_v38 = vadd.f32 1.0, %v784_v33  ;;  %797 = vtanh.f32 %v222_v28 }
  0x60   : > { %v788_v39 = vpop.eup %787  ;;  %468 = vst [vmem:[%s1030_s16 + $0x1a0] sm:$0xff] %v404_v34  ;;  %v406_v40 = vmul.f32 0.5, %v342_v35  ;;  %v344_v41 = vadd.f32 1.0, %v786_v36  ;;  %799 = vtanh.f32 %v223_v32 }
  0x61   : > { %v790_v42 = vpop.eup %789  ;;  %469 = vst [vmem:[%s1030_s16 + $0x1a8] sm:$0xff] %v405_v37  ;;  %v407_v43 = vmul.f32 0.5, %v343_v38  ;;  %v345_v44 = vadd.f32 1.0, %v788_v39 }
  0x62   : > { %v792_v45 = vpop.eup %791  ;;  %470 = vst [vmem:[%s1030_s16 + $0x1b0] sm:$0xff] %v406_v40  ;;  %v408_v46 = vmul.f32 0.5, %v344_v41  ;;  %v346_v47 = vadd.f32 1.0, %v790_v42 }
  0x63   : > { %v794_v48 = vpop.eup %793  ;;  %471 = vst [vmem:[%s1030_s16 + $0x1b8] sm:$0xff] %v407_v43  ;;  %v409_v49 = vmul.f32 0.5, %v345_v44  ;;  %v347_v50 = vadd.f32 1.0, %v792_v45 }
  0x64   : > { %v796_v51 = vpop.eup %795  ;;  %472 = vst [vmem:[%s1030_s16 + $0x1c0] sm:$0xff] %v408_v46  ;;  %v410_v52 = vmul.f32 0.5, %v346_v47  ;;  %v348_v53 = vadd.f32 1.0, %v794_v48 }
  0x65   : > { %v798_v54 = vpop.eup %797  ;;  %473 = vst [vmem:[%s1030_s16 + $0x1c8] sm:$0xff] %v409_v49  ;;  %v411_v55 = vmul.f32 0.5, %v347_v50  ;;  %v349_v56 = vadd.f32 1.0, %v796_v51 }
  0x66   : > { %v800_v57 = vpop.eup %799  ;;  %474 = vst [vmem:[%s1030_s16 + $0x1d0] sm:$0xff] %v410_v52  ;;  %v412_v58 = vmul.f32 0.5, %v348_v53  ;;  %v350_v59 = vadd.f32 1.0, %v798_v54 }
  0x67   : > { %475 = vst [vmem:[%s1030_s16 + $0x1d8] sm:$0xff] %v411_v55  ;;  %v413_v60 = vmul.f32 0.5, %v349_v56  ;;  %v351_v61 = vadd.f32 1.0, %v800_v57 }
  0x68   : > { %476 = vst [vmem:[%s1030_s16 + $0x1e0] sm:$0xff] %v412_v58  ;;  %v414_v62 = vmul.f32 0.5, %v350_v59 }
  0x69   : > { %477 = vst [vmem:[%s1030_s16 + $0x1e8] sm:$0xff] %v413_v60  ;;  %v415_v63 = vmul.f32 0.5, %v351_v61 }
  0x6a   : > { %478 = vst [vmem:[%s1030_s16 + $0x1f0] sm:$0xff] %v414_v62 }
  0x6b   : > { %479 = vst [vmem:[%s1030_s16 + $0x1f8] sm:$0xff] %v415_v63 }
  0x6c   : > { %858 = shalt.err (!%p855_p10)
}
  0x6d   : > { %s917_s4 = smov 4096   ;;  %s918_s5 = smov 256  }
  0x6e   : > { %609 = dma.vmem_to_hbm [thread:$0]  (%p980_p9), %s497_s23, 8192, %s499_s24, %s481_s25, %s917_s4, %s917_s4, %s918_s5  }
  0x6f PF: > { %p620_p12 = scmp.ge.s32.totalorder %s913_s11, 2  ;;  %s513_s12 = sand.u32 1, %s893_s6  }
  0x70   : > { %s514_s13 = scalar_lea.sflag [#allocation4], %s513_s12 }
  0x71   : > { %p616_p13 = pnand %p620_p12, %p987_p11 }
  0x73   : > { %p617_p0 = pneg %p616_p13 }
  0x75   : > { %888 = dma.done.wait (%p617_p0), %s514_s13, 8192  }
  0x76   : > { %890 = vsyncadd (%p617_p0), %s514_s13, 4294959104  ;;  %s17_s11 = sadd.s32 1, %s913_s11   ;;  %s1190_s6 = smov %s897_s7 }
  0x77   : > { %p14_p1 = scmp.ge.s32.totalorder %s17_s11, 10   ;;  %s1191_s7 = smov %s901_s8 }
  0x78   : > { %s1192_s8 = smov %s985_s20  ;;  %s1193_s9 = smov %s909_s10 }
  0x79   : > { %s1194_s10 = smov %s1196_s14  ;;  %16 = sbr.rel (!%p14_p1) target bundleno = 6 (0x6), region = 69 }
  0x7e   :  { %520 = vsyncpa [#allocation3], 1 }
  0x7f   :  { %522 = vsyncpa [#allocation3 + $0x1], 1 }
  0x80   :  { %523 = vsyncpa [#allocation4], 1 }
  0x81   :  { %525 = vsyncpa [#allocation4 + $0x1], 1 }

</bundles_post_ra>
